<compile_context>
chip_gen: v5e
topology: v5e:2x2
jax: 0.10.0
libtpu: 0.0.40
codegen_flags: <defaults>
</compile_context>

<pallas_src>
import jax
import jax.numpy as jnp
from jax.experimental import pallas as pl
from jax.experimental.pallas import tpu as pltpu


def _round_up(x, m):
    return (x + m - 1) // m * m


def _sublanes(dtype):
    # sublane quantum per dtype: f32 -> 8, bf16/f16 -> 16, int8/fp8 -> 32
    return max(8, 8 * (4 // jnp.dtype(dtype).itemsize))


def _choose_tiling(B, sub, tb_budget):
    """Pick (n_split, n_bt, tb): grid = (n_split, n_bt), batch tile = tb rows.

    Guarantees: tb is a multiple of `sub` (or tb == B for a single full-dim
    tile), n_split * n_bt * tb >= B, and NO grid step maps to a fully
    out-of-bounds batch tile (tb * (n_split * n_bt - 1) < B), so only the
    globally last tile can be partial.
    """
    # 2-way split (megacore) only when the batch is big enough that the
    # worst-case padded-row overhead of splitting stays small.
    split_candidates = (2, 1) if B >= 8 * sub else (1,)
    for n_split in split_candidates:
        if n_split == 1 and B <= tb_budget:
            return 1, 1, B                      # one full-dim tile, no masking
        rows_per_split = -(-B // n_split)
        n_bt = max(1, -(-rows_per_split // tb_budget))
        while n_bt >= 1:
            total = n_split * n_bt
            if total == 1:
                return 1, 1, B
            tb = _round_up(-(-B // total), sub)
            if tb * (total - 1) < B:            # last tile keeps >= 1 valid row
                return n_split, n_bt, tb
            n_bt -= 1
    return 1, 1, B


def weighted_by_class_bce_loss(output, target, classes_mask=None,
                               block_rows=None):
    """Forward pass of WeigthedByClassBCELoss.

    output: (B, C) logits, any float dtype (bf16 recommended when HBM-bound).
    target: (B, C) 0/1 targets, any float dtype (0/1 are exact in bf16).
    classes_mask: optional (C,) 0/1 mask (same semantics as the module).
    """
    assert output.ndim == 2 and target.ndim == 2, (output.ndim, target.ndim)
    B, C = output.shape
    assert target.shape == (B, C), (target.shape, (B, C))

    isz_l = jnp.dtype(output.dtype).itemsize
    isz_t = jnp.dtype(target.dtype).itemsize
    sub = max(_sublanes(output.dtype), _sublanes(target.dtype))
    c_lanes = _round_up(C, 128)            # lane-padded width of VMEM buffers

    # Batch-tile budget: keep one f32 working tile (tb x C) around 2 MiB so
    # double-buffered inputs + in-kernel f32 temporaries fit comfortably in
    # scoped VMEM on every generation.
    if block_rows is not None:
        tb_budget = max(sub, _round_up(int(block_rows), sub))
    else:
        tile_f32_budget = 2 << 20
        tb_budget = max(sub, (tile_f32_budget // (c_lanes * 4)) // sub * sub)

    n_split, n_bt, tb = _choose_tiling(B, sub, tb_budget)
    ragged = (n_split * n_bt * tb != B)    # last batch tile is partial

    def kernel(logit_ref, target_ref, out_ref, pos_sc, spos_sc, sbce_sc):
        i = pl.program_id(1)               # batch step (reduction, innermost)

        @pl.when(i == 0)
        def _():
            pos_sc[...] = jnp.zeros_like(pos_sc)
            spos_sc[...] = jnp.zeros_like(spos_sc)
            sbce_sc[...] = jnp.zeros_like(sbce_sc)

        x = logit_ref[...].astype(jnp.float32)     # (tb, C)
        t = target_ref[...].astype(jnp.float32)    # (tb, C)

        if ragged:
            # Partial last tile: rows >= B hold stale/undefined VMEM data, so
            # mask BOTH t and bce (garbage may be NaN/Inf; where() selects).
            tile = pl.program_id(0) * n_bt + i
            rows = jax.lax.broadcasted_iota(jnp.int32, (tb, 1), 0) + tile * tb
            valid = rows < B
            t = jnp.where(valid, t, 0.0)

        # BCEWithLogitsLoss(reduction='none'): max(x,0) - x*t + log1p(exp(-|x|))
        bce = jnp.maximum(x, 0.0) - x * t + jnp.log1p(jnp.exp(-jnp.abs(x)))
        if ragged:
            bce = jnp.where(valid, bce, 0.0)

        # streaming per-class partials (f32): pos count, sum(t*bce), sum(bce)
        pos_sc[...] += jnp.sum(t, axis=0, keepdims=True)
        spos_sc[...] += jnp.sum(t * bce, axis=0, keepdims=True)
        sbce_sc[...] += jnp.sum(bce, axis=0, keepdims=True)

        @pl.when(i == pl.num_programs(1) - 1)
        def _():
            out_ref[0:1, :] = pos_sc[...]
            out_ref[1:2, :] = spos_sc[...]
            out_ref[2:3, :] = sbce_sc[...]

    # VMEM ask computed from actual usage (double-buffered inputs + in-kernel
    # f32 temporaries + headroom), not a flat 48 MiB.
    tb_pad = _round_up(tb, sub)
    pipeline_bytes = 2 * tb_pad * c_lanes * (isz_l + isz_t)
    work_bytes = 6 * tb_pad * c_lanes * 4
    vmem_limit = int(max(16 << 20, pipeline_bytes + work_bytes + (8 << 20)))

    parts = pl.pallas_call(
        kernel,
        out_shape=jax.ShapeDtypeStruct((n_split, 3, C), jnp.float32),
        grid_spec=pltpu.PrefetchScalarGridSpec(
            num_scalar_prefetch=0,
            grid=(n_split, n_bt),                  # (parallel split, batch steps)
            in_specs=[
                pl.BlockSpec((tb, C), lambda s, i: (s * n_bt + i, 0)),   # logits
                pl.BlockSpec((tb, C), lambda s, i: (s * n_bt + i, 0)),   # targets
            ],
            out_specs=pl.BlockSpec((None, 3, C), lambda s, i: (s, 0, 0)),
            scratch_shapes=[
                pltpu.VMEM((1, C), jnp.float32),   # pos count
                pltpu.VMEM((1, C), jnp.float32),   # sum(t * bce)
                pltpu.VMEM((1, C), jnp.float32),   # sum(bce)
            ],
        ),
        compiler_params=pltpu.CompilerParams(
            dimension_semantics=("parallel", "arbitrary"),
            vmem_limit_bytes=vmem_limit,
        ),
    )(output, target)

    # Wrapper finalize on tiny (C,)-vectors: combine per-split partials,
    # compute class weights and the final normalization (moved out of the
    # kernel so the megacore splits never share an accumulator).
    pos, spos, sbce = jnp.sum(parts, axis=0)
    total = jnp.float32(B)
    neg = total - pos                              # == sum(1 - t) over batch
    pos_w = jnp.clip(neg / jnp.clip(pos, 1.0, total), 1.0, total)
    neg_w = jnp.clip(pos / jnp.clip(neg, 1.0, total), 1.0, total)
    per_class = pos_w * spos + neg_w * (sbce - spos)     # sneg = sbce - spos
    if classes_mask is None:
        return jnp.sum(per_class) / (jnp.float32(C) * total)
    m = jnp.asarray(classes_mask).reshape(-1).astype(jnp.float32)
    n_classes = jnp.sum(m)
    return jnp.sum(per_class * m) / (n_classes * total)


def _reference(output, target, classes_mask=None):
    """Pure-JAX reference mirroring the PyTorch module."""
    x = output.astype(jnp.float32)
    t = target.astype(jnp.float32)
    total = float(output.shape[0])
    pos = t.sum(0)
    neg = (1.0 - t).sum(0)
    pos_w = jnp.clip(neg / jnp.clip(pos, 1.0, total), 1.0, total)
    neg_w = jnp.clip(pos / jnp.clip(neg, 1.0, total), 1.0, total)
    bce = jnp.maximum(x, 0.0) - x * t + jnp.log1p(jnp.exp(-jnp.abs(x)))
    loss = (t * pos_w + (1.0 - t) * neg_w) * bce
    if classes_mask is not None:
        m = jnp.asarray(classes_mask).astype(jnp.float32)
        return jnp.sum(loss * m) / (jnp.sum(m) * total)
    return jnp.mean(loss)


if __name__ == "__main__":
    key = jax.random.PRNGKey(0)
    ks = jax.random.split(key, 8)

    def check(name, out, tgt, mask=None, block_rows=None, rtol=2e-5, atol=1e-6):
        got = weighted_by_class_bce_loss(out, tgt, mask, block_rows=block_rows)
        jax.block_until_ready(got)
        want = _reference(out, tgt, mask)
        assert jnp.allclose(got, want, rtol=rtol, atol=atol), \
            (name, float(got), float(want))

    # 1) tiny f32, single full-dim tile, no mask (== mean over all elements)
    B, C = 8, 16
    logits = jax.random.normal(ks[0], (B, C), dtype=jnp.float32)
    target = (jax.random.uniform(ks[1], (B, C)) < 0.5).astype(jnp.float32)
    check("small_f32", logits, target)

    # 2) same inputs with a classes_mask (every other class enabled)
    mask = (jnp.arange(C) % 2 == 0).astype(jnp.float32)
    check("small_f32_mask", logits, target, mask)

    # 3) bf16 logits, unaligned B and C, forced small tiles: exercises the
    #    no-pad full-C block, multi-step streaming accumulation and the
    #    ragged-batch row mask.
    B2, C2 = 50, 200
    logits2 = jax.random.normal(ks[2], (B2, C2), dtype=jnp.bfloat16)
    target2 = (jax.random.uniform(ks[3], (B2, C2)) < 0.3).astype(jnp.float32)
    check("bf16_ragged", logits2, target2, block_rows=16, rtol=1e-4, atol=1e-5)

    # 4) f32, batch big enough to trigger the 2-way parallel (megacore) split,
    #    multiple batch steps per split, ragged last tile.
    B3, C3 = 120, 40
    logits3 = jax.random.normal(ks[4], (B3, C3), dtype=jnp.float32)
    target3 = (jax.random.uniform(ks[5], (B3, C3)) < 0.4).astype(jnp.float32)
    check("split_ragged", logits3, target3, block_rows=32)

    # 5) bf16 targets (0/1 exact in bf16), aligned batch, 2-way split, no mask.
    B4, C4 = 128, 40
    logits4 = jax.random.normal(ks[6], (B4, C4), dtype=jnp.float32)
    target4 = (jax.random.uniform(ks[7], (B4, C4)) < 0.5).astype(jnp.bfloat16)
    check("bf16_targets_split", logits4, target4)

    print("KERNEL_OK")
</pallas_src>

<mosaic_0001>
module attributes {stable_mosaic.version = 11 : i64} {
  func.func @kernel(%arg0: i32, %arg1: i32, %arg2: memref<8x16xf32, #tpu.memory_space<vmem>>, %arg3: memref<8x16xf32, #tpu.memory_space<vmem>>, %arg4: memref<1x3x16xf32, #tpu.memory_space<vmem>>, %arg5: memref<1x16xf32, #tpu.memory_space<vmem>>, %arg6: memref<1x16xf32, #tpu.memory_space<vmem>>, %arg7: memref<1x16xf32, #tpu.memory_space<vmem>>) attributes {dimension_semantics = [#tpu.dimension_semantics<parallel>, #tpu.dimension_semantics<arbitrary>], iteration_bounds = array<i64: 1, 1>, scalar_prefetch = 0 : i64, scratch_operands = 3 : i64, tpu.core_type = #tpu.core_type<tc>, window_params = [{transform_indices = @transform_0, window_bounds = array<i64: 8, 16>}, {transform_indices = @transform_1, window_bounds = array<i64: 8, 16>}, {transform_indices = @transform_2, window_bounds = array<i64: 1, 3, 16>}]} {
    %c0_i32 = arith.constant 0 : i32
    %0 = arith.cmpi eq, %arg1, %c0_i32 : i32
    %1 = arith.extui %0 : i1 to i32
    %c0_i32_0 = arith.constant 0 : i32
    %2 = arith.cmpi ne, %1, %c0_i32_0 : i32
    scf.if %2 {
      %cst_22 = arith.constant 0.000000e+00 : f32
      %34 = vector.broadcast %cst_22 : f32 to vector<1x16xf32>
      %c0_23 = arith.constant 0 : index
      %c0_24 = arith.constant 0 : index
      %35 = vector.load %arg5[%c0_23, %c0_24] : memref<1x16xf32, #tpu.memory_space<vmem>>, vector<1x16xf32>
      tpu.vector_store %arg5[%c0_23, %c0_24], %34 {strides = array<i32>} : memref<1x16xf32, #tpu.memory_space<vmem>>, vector<1x16xf32>,
      %cst_25 = arith.constant 0.000000e+00 : f32
      %36 = vector.broadcast %cst_25 : f32 to vector<1x16xf32>
      %c0_26 = arith.constant 0 : index
      %c0_27 = arith.constant 0 : index
      %37 = vector.load %arg6[%c0_26, %c0_27] : memref<1x16xf32, #tpu.memory_space<vmem>>, vector<1x16xf32>
      tpu.vector_store %arg6[%c0_26, %c0_27], %36 {strides = array<i32>} : memref<1x16xf32, #tpu.memory_space<vmem>>, vector<1x16xf32>,
      %cst_28 = arith.constant 0.000000e+00 : f32
      %38 = vector.broadcast %cst_28 : f32 to vector<1x16xf32>
      %c0_29 = arith.constant 0 : index
      %c0_30 = arith.constant 0 : index
      %39 = vector.load %arg7[%c0_29, %c0_30] : memref<1x16xf32, #tpu.memory_space<vmem>>, vector<1x16xf32>
      tpu.vector_store %arg7[%c0_29, %c0_30], %38 {strides = array<i32>} : memref<1x16xf32, #tpu.memory_space<vmem>>, vector<1x16xf32>,
    } else {
    }
    %c0 = arith.constant 0 : index
    %c0_1 = arith.constant 0 : index
    %3 = vector.load %arg2[%c0, %c0_1] : memref<8x16xf32, #tpu.memory_space<vmem>>, vector<8x16xf32>
    %c0_2 = arith.constant 0 : index
    %c0_3 = arith.constant 0 : index
    %4 = vector.load %arg3[%c0_2, %c0_3] : memref<8x16xf32, #tpu.memory_space<vmem>>, vector<8x16xf32>
    %cst = arith.constant 0.000000e+00 : f32
    %5 = vector.broadcast %cst : f32 to vector<8x16xf32>
    %6 = arith.maximumf %3, %5 : vector<8x16xf32>
    %7 = arith.mulf %3, %4 : vector<8x16xf32>
    %8 = arith.subf %6, %7 : vector<8x16xf32>
    %9 = math.absf %3 : vector<8x16xf32>
    %cst_4 = arith.constant 0.000000e+00 : f32
    %10 = vector.broadcast %cst_4 : f32 to vector<8x16xf32>
    %11 = arith.subf %10, %9 : vector<8x16xf32>
    %12 = math.exp %11 : vector<8x16xf32>
    %13 = math.log1p %12 : vector<8x16xf32>
    %14 = arith.addf %8, %13 : vector<8x16xf32>
    %c0_5 = arith.constant 0 : index
    %c0_6 = arith.constant 0 : index
    %15 = vector.load %arg5[%c0_5, %c0_6] : memref<1x16xf32, #tpu.memory_space<vmem>>, vector<1x16xf32>
    %cst_7 = arith.constant dense<0.000000e+00> : vector<16xf32>
    %16 = vector.multi_reduction <add>, %4, %cst_7 [0] : vector<8x16xf32> to vector<16xf32>
    %17 = vector.shape_cast %16 : vector<16xf32> to vector<1x16xf32>
    %18 = arith.addf %15, %17 : vector<1x16xf32>
    %c0_8 = arith.constant 0 : index
    %c0_9 = arith.constant 0 : index
    %19 = vector.load %arg5[%c0_8, %c0_9] : memref<1x16xf32, #tpu.memory_space<vmem>>, vector<1x16xf32>
    tpu.vector_store %arg5[%c0_8, %c0_9], %18 {strides = array<i32>} : memref<1x16xf32, #tpu.memory_space<vmem>>, vector<1x16xf32>,
    %c0_10 = arith.constant 0 : index
    %c0_11 = arith.constant 0 : index
    %20 = vector.load %arg6[%c0_10, %c0_11] : memref<1x16xf32, #tpu.memory_space<vmem>>, vector<1x16xf32>
    %21 = arith.mulf %4, %14 : vector<8x16xf32>
    %cst_12 = arith.constant dense<0.000000e+00> : vector<16xf32>
    %22 = vector.multi_reduction <add>, %21, %cst_12 [0] : vector<8x16xf32> to vector<16xf32>
    %23 = vector.shape_cast %22 : vector<16xf32> to vector<1x16xf32>
    %24 = arith.addf %20, %23 : vector<1x16xf32>
    %c0_13 = arith.constant 0 : index
    %c0_14 = arith.constant 0 : index
    %25 = vector.load %arg6[%c0_13, %c0_14] : memref<1x16xf32, #tpu.memory_space<vmem>>, vector<1x16xf32>
    tpu.vector_store %arg6[%c0_13, %c0_14], %24 {strides = array<i32>} : memref<1x16xf32, #tpu.memory_space<vmem>>, vector<1x16xf32>,
    %c0_15 = arith.constant 0 : index
    %c0_16 = arith.constant 0 : index
    %26 = vector.load %arg7[%c0_15, %c0_16] : memref<1x16xf32, #tpu.memory_space<vmem>>, vector<1x16xf32>
    %cst_17 = arith.constant dense<0.000000e+00> : vector<16xf32>
    %27 = vector.multi_reduction <add>, %14, %cst_17 [0] : vector<8x16xf32> to vector<16xf32>
    %28 = vector.shape_cast %27 : vector<16xf32> to vector<1x16xf32>
    %29 = arith.addf %26, %28 : vector<1x16xf32>
    %c0_18 = arith.constant 0 : index
    %c0_19 = arith.constant 0 : index
    %30 = vector.load %arg7[%c0_18, %c0_19] : memref<1x16xf32, #tpu.memory_space<vmem>>, vector<1x16xf32>
    tpu.vector_store %arg7[%c0_18, %c0_19], %29 {strides = array<i32>} : memref<1x16xf32, #tpu.memory_space<vmem>>, vector<1x16xf32>,
    %c0_i32_20 = arith.constant 0 : i32
    %31 = arith.cmpi eq, %arg1, %c0_i32_20 : i32
    %32 = arith.extui %31 : i1 to i32
    %c0_i32_21 = arith.constant 0 : i32
    %33 = arith.cmpi ne, %32, %c0_i32_21 : i32
    scf.if %33 {
      %c0_22 = arith.constant 0 : index
      %c0_23 = arith.constant 0 : index
      %34 = vector.load %arg5[%c0_22, %c0_23] : memref<1x16xf32, #tpu.memory_space<vmem>>, vector<1x16xf32>
      %c0_24 = arith.constant 0 : index
      %c0_25 = arith.constant 0 : index
      %c0_26 = arith.constant 0 : index
      %35 = vector.load %arg4[%c0_24, %c0_25, %c0_26] : memref<1x3x16xf32, #tpu.memory_space<vmem>>, vector<1x1x16xf32>
      %36 = vector.shape_cast %35 : vector<1x1x16xf32> to vector<1x16xf32>
      %37 = vector.shape_cast %34 : vector<1x16xf32> to vector<1x1x16xf32>
      tpu.vector_store %arg4[%c0_24, %c0_25, %c0_26], %37 {strides = array<i32>} : memref<1x3x16xf32, #tpu.memory_space<vmem>>, vector<1x1x16xf32>,
      %c0_27 = arith.constant 0 : index
      %c0_28 = arith.constant 0 : index
      %38 = vector.load %arg6[%c0_27, %c0_28] : memref<1x16xf32, #tpu.memory_space<vmem>>, vector<1x16xf32>
      %c0_29 = arith.constant 0 : index
      %c1 = arith.constant 1 : index
      %c0_30 = arith.constant 0 : index
      %39 = vector.load %arg4[%c0_29, %c1, %c0_30] : memref<1x3x16xf32, #tpu.memory_space<vmem>>, vector<1x1x16xf32>
      %40 = vector.shape_cast %39 : vector<1x1x16xf32> to vector<1x16xf32>
      %41 = vector.shape_cast %38 : vector<1x16xf32> to vector<1x1x16xf32>
      tpu.vector_store %arg4[%c0_29, %c1, %c0_30], %41 {strides = array<i32>} : memref<1x3x16xf32, #tpu.memory_space<vmem>>, vector<1x1x16xf32>,
      %c0_31 = arith.constant 0 : index
      %c0_32 = arith.constant 0 : index
      %42 = vector.load %arg7[%c0_31, %c0_32] : memref<1x16xf32, #tpu.memory_space<vmem>>, vector<1x16xf32>
      %c0_33 = arith.constant 0 : index
      %c2 = arith.constant 2 : index
      %c0_34 = arith.constant 0 : index
      %43 = vector.load %arg4[%c0_33, %c2, %c0_34] : memref<1x3x16xf32, #tpu.memory_space<vmem>>, vector<1x1x16xf32>
      %44 = vector.shape_cast %43 : vector<1x1x16xf32> to vector<1x16xf32>
      %45 = vector.shape_cast %42 : vector<1x16xf32> to vector<1x1x16xf32>
      tpu.vector_store %arg4[%c0_33, %c2, %c0_34], %45 {strides = array<i32>} : memref<1x3x16xf32, #tpu.memory_space<vmem>>, vector<1x1x16xf32>,
    } else {
    }
    return
  }
  func.func @transform_0(%arg0: i32, %arg1: i32) -> (i32, i32) {
    %c1_i32 = arith.constant 1 : i32
    %0 = arith.muli %arg0, %c1_i32 : i32
    %1 = arith.addi %0, %arg1 : i32
    %c0_i32 = arith.constant 0 : i32
    %c0_i32_0 = arith.constant 0 : i32
    return %1, %c0_i32 : i32, i32
  }
  func.func @transform_1(%arg0: i32, %arg1: i32) -> (i32, i32) {
    %c1_i32 = arith.constant 1 : i32
    %0 = arith.muli %arg0, %c1_i32 : i32
    %1 = arith.addi %0, %arg1 : i32
    %c0_i32 = arith.constant 0 : i32
    %c0_i32_0 = arith.constant 0 : i32
    return %1, %c0_i32 : i32, i32
  }
  func.func @transform_2(%arg0: i32, %arg1: i32) -> (i32, i32, i32) {
    %c0_i32 = arith.constant 0 : i32
    %c0_i32_0 = arith.constant 0 : i32
    %c0_i32_1 = arith.constant 0 : i32
    return %arg0, %c0_i32, %c0_i32_0 : i32, i32, i32
  }
}

</mosaic_0001>

<bundles_post_ra>
// kernel: tpu_custom_call.1
= control target key start
LH: loop header
LB: loop body
LE: loop exit
PB: predicated region body
PF: predicated region fallthrough
CT: control target
= control target key end

     0   :  { %7 = vsyncpa [#allocation6], 0  ;;  %s226_s0 = inlined_call_operand.hbm [shape: f32[8,16], index: 0, kind: input, shape index: {}]   ;;  %s227_s1 = inlined_call_operand.hbm [shape: f32[8,16], index: 1, kind: input, shape index: {}]   ;;  %s228_s2 = inlined_call_operand.vmem [shape: f32[1,3,16], index: 2, kind: output, shape index: {}]  }
   0x1   :  { %s17_s11 = sshll.u32 %s226_s0, 4  ;;  %s18_s11 = int_to_ptr.hbm [resolvable:$true] %s17_s11 }
   0x2   :  { %8 = vsyncpa [#allocation8], 0  ;;  %s181_s12 = smov [#allocation5]   ;;  %s31_s16 = sshll.u32 %s227_s1, 4  ;;  %s32_s16 = int_to_ptr.hbm [resolvable:$true] %s31_s16 }
   0x3   :  { %s19_s13 = sshll.u32 %s181_s12, 4  ;;  %s182_s17 = smov [#allocation7]   ;;  %s20_s13 = int_to_ptr.vmem [resolvable:$true] %s19_s13 }
   0x4   :  { %22 = dma.hbm_to_vmem [thread:$0]  %s18_s11, 128, %s20_s13, [#allocation6]  }
   0x5   :  { %s33_s18 = sshll.u32 %s182_s17, 4  ;;  %s34_s18 = int_to_ptr.vmem [resolvable:$true] %s33_s18 }
   0x6   :  { %36 = dma.hbm_to_vmem [thread:$0]  %s32_s16, 128, %s34_s18, [#allocation8]  }
   0x7   :  { %177 = dma.done.wait [#allocation6], 128  }
   0x8   :  { %178 = vsyncadd [#allocation6], 4294967168 }
   0x9   :  { %179 = dma.done.wait [#allocation8], 128  }
   0xa   :  { %180 = vsyncadd [#allocation8], 4294967168  ;;  %vm51_vm0 = vcmask 122880   ;;  %v183_v0 = vmov 0.0   ;;  %vm75_vm1 = vcmask 130048   ;;  %v55_v1 = vld [vmem:[#allocation5] sm:$0xff] }
   0xb   :  { %52 = vst.msk [vmem:[#allocation2] sm:$0x1] %vm51_vm0, %v183_v0  ;;  %v56_v2 = vld [vmem:[#allocation7] sm:$0xff]  ;;  %v60_v3 = vand.u32 2147483647, %v55_v1  ;;  %v57_v20 = vmax.f32 %v55_v1, 0.0 }
   0xc   :  { %53 = vst.msk [vmem:[#allocation3] sm:$0x1] %vm51_vm0, %v183_v0  ;;  %v76_v4 = vsel %vm75_vm1, %v56_v2, 0.0  ;;  %v58_v19 = vmul.f32 %v56_v2, %v55_v1 }
   0xd   :  { %54 = vst.msk [vmem:[#allocation4] sm:$0x1] %vm51_vm0, %v183_v0  ;;  %v77_v5 = vrot.slane %v76_v4, 4  ;;  %v61_v6 = vsub.f32 0.0, %v60_v3 }
   0xe   :  { %v59_v24 = vsub.f32 %v57_v20, %v58_v19 }
   0xf   :  { %v78_v7 = vadd.f32 %v77_v5, %v76_v4  ;;  %v62_v8 = vmul.f32 1.442695, %v61_v6 }
  0x11   :  { %v79_v9 = vrot.slane %v78_v7, 2  ;;  %125 = vpow2.f32 %v62_v8 }
  0x12   :  { %v74_v12 = vld [vmem:[#allocation2] sm:$0x1] }
  0x13   :  { %v80_v10 = vadd.f32 %v79_v9, %v78_v7  ;;  %v86_v44 = vld [vmem:[#allocation3] sm:$0x1] }
  0x14   :  { %v97_v41 = vld [vmem:[#allocation4] sm:$0x1] }
  0x15   :  { %v81_v11 = vrot.slane %v80_v10, 1 }
  0x17   :  { %v82_v13 = vadd.f32 %v81_v11, %v80_v10  ;;  %v126_v14 = vpop.eup %125 }
  0x18   :  { %v64_v16 = vadd.f32 1.0, %v126_v14  ;;  %v67_v17 = vmul.f32 -0.5, %v126_v14  ;;  %v70_v21 = vand.u32 2147483647, %v126_v14 }
  0x19   :  { %v83_v15 = vadd.f32 %v82_v13, %v74_v12 }
  0x1a   :  { %127 = vlog2.f32 %v64_v16  ;;  %v68_v18 = vadd.f32 1.0, %v67_v17  ;;  %vm71_vm2 = vcmp.lt.f32.partialorder %v70_v21, 0.0004427343 }
  0x1b   :  { %85 = vst.msk [vmem:[#allocation2] sm:$0x1] %vm51_vm0, %v83_v15 }
  0x1c   :  { %v69_v22 = vmul.f32 %v126_v14, %v68_v18 }
  0x20   :  { %v128_v23 = vpop.eup %127 }
  0x21   :  { %v66_v25 = vmul.f32 0.6931472, %v128_v23 }
  0x22   :  { %v110_v26 = vld [vmem:[#allocation2] sm:$0x1] }
  0x23   :  { %111 = vst.msk [vmem:[%s228_s2] sm:$0x1] %vm51_vm0, %v110_v26  ;;  %v72_v27 = vsel %vm71_vm2, %v69_v22, %v66_v25 }
  0x24   :  { %v73_v28 = vadd.f32 %v72_v27, %v59_v24 }
  0x26   :  { %v87_v29 = vmul.f32 %v73_v28, %v56_v2  ;;  %v98_v30 = vsel %vm75_vm1, %v73_v28, 0.0 }
  0x27   :  { %v99_v31 = vrot.slane %v98_v30, 4 }
  0x28   :  { %v88_v32 = vsel %vm75_vm1, %v87_v29, 0.0 }
  0x29   :  { %v89_v33 = vrot.slane %v88_v32, 4  ;;  %v100_v34 = vadd.f32 %v99_v31, %v98_v30 }
  0x2b   :  { %v90_v35 = vadd.f32 %v89_v33, %v88_v32  ;;  %v101_v36 = vrot.slane %v100_v34, 2 }
  0x2d   :  { %v91_v37 = vrot.slane %v90_v35, 2  ;;  %v102_v38 = vadd.f32 %v101_v36, %v100_v34 }
  0x2f   :  { %v92_v39 = vadd.f32 %v91_v37, %v90_v35  ;;  %v103_v40 = vrot.slane %v102_v38, 1 }
  0x31   :  { %v93_v42 = vrot.slane %v92_v39, 1  ;;  %v104_v43 = vadd.f32 %v103_v40, %v102_v38 }
  0x33   :  { %v94_v45 = vadd.f32 %v93_v42, %v92_v39  ;;  %v105_v46 = vadd.f32 %v104_v43, %v97_v41 }
  0x35   :  { %v95_v47 = vadd.f32 %v94_v45, %v86_v44  ;;  %106 = vst.msk [vmem:[#allocation4] sm:$0x1] %vm51_vm0, %v105_v46 }
  0x37   :  { %96 = vst.msk [vmem:[#allocation3] sm:$0x1] %vm51_vm0, %v95_v47 }
  0x3c   :  { %v114_v48 = vld [vmem:[#allocation4] sm:$0x1] }
  0x3d   :  { %115 = vst.msk [vmem:[%s228_s2 + $0x2] sm:$0x1] %vm51_vm0, %v114_v48 }
  0x3e   :  { %v112_v49 = vld [vmem:[#allocation3] sm:$0x1] }
  0x3f   :  { %113 = vst.msk [vmem:[%s228_s2 + $0x1] sm:$0x1] %vm51_vm0, %v112_v49 }
  0x40   :  { %120 = vsyncpa [#allocation6], 1 }
  0x41   :  { %121 = vsyncpa [#allocation8], 1 }

</bundles_post_ra>
